<compile_context>
chip_gen: v7x
topology: tpu7x:2x2x1
jax: 0.10.0
libtpu: 0.0.40
codegen_flags: <defaults>
</compile_context>

<pallas_src>
import jax
import jax.numpy as jnp
from jax import lax
from jax.experimental import pallas as pl
from jax.experimental.pallas import tpu as pltpu


def _seq_attn_kernel(x_ref, y_ref, mask_ref, wt_ref, b_ref, out_ref, yproj_ref):
    li = pl.program_id(1)                 # L1-tile index (innermost, "arbitrary")

    Bt, tl, H = x_ref.shape
    _, L2, _ = y_ref.shape

    wt = wt_ref[...]                      # (H, H) bf16, pre-transposed: x @ wt == x @ W.T
    b = b_ref[...]                        # (1, H) f32

    # --- project y once per batch tile; cache bf16 y_proj across the L1-tile axis ---
    @pl.when(li == 0)
    def _():
        y2d = y_ref[...].reshape(Bt * L2, H).astype(jnp.bfloat16)
        yp = jnp.dot(y2d, wt, preferred_element_type=jnp.float32)
        yp = jnp.maximum(yp + b, 0.0)
        yproj_ref[...] = yp.reshape(Bt, L2, H).astype(jnp.bfloat16)

    # --- project the whole (Bt*tl, H) slab of x in one MXU pass ---
    x2d = x_ref[...].reshape(Bt * tl, H).astype(jnp.bfloat16)
    xp = jnp.dot(x2d, wt, preferred_element_type=jnp.float32)
    xp = jnp.maximum(xp + b, 0.0)
    x_proj = xp.reshape(Bt, tl, H).astype(jnp.bfloat16)

    # --- scores[b, i, j] = <x_proj[b, i], y_proj[b, j]>  (NT contraction, no transpose) ---
    scores = lax.dot_general(
        x_proj, yproj_ref[...],
        dimension_numbers=(((2,), (2,)), ((0,), (0,))),
        preferred_element_type=jnp.float32)                 # (Bt, tl, L2) f32

    # masked_fill with a large finite negative (same softmax result as -inf, no NaNs)
    scores = jnp.where(mask_ref[...] > 0, jnp.float32(-1e30), scores)

    # --- numerically stable softmax over L2; reciprocal on the EUP instead of VALU divide ---
    s_max = jnp.max(scores, axis=-1, keepdims=True)
    e = jnp.exp(scores - s_max)
    denom = jnp.sum(e, axis=-1, keepdims=True)
    alpha = e * pl.reciprocal(denom, approx=True)           # (Bt, tl, L2)

    # --- matched_seq = alpha @ y  (original y, not y_proj) ---
    out = lax.dot_general(
        alpha.astype(jnp.bfloat16), y_ref[...].astype(jnp.bfloat16),
        dimension_numbers=(((2,), (1,)), ((0,), (0,))),
        preferred_element_type=jnp.float32)                 # (Bt, tl, H) f32
    out_ref[...] = out
    # need_attention=True (returning alpha) could be supported with a second (B, L1, L2) output.


def seq_attn_match(x, y, y_mask, weight, bias, *, batch_tile=None, l1_tile=None,
                   vmem_limit_bytes=32 * 1024 * 1024):
    """x: (B,L1,H) f32, y: (B,L2,H) f32, y_mask: (B,L2) bool/int (1 = masked),
    weight: (H,H) f32 (nn.Linear weight), bias: (H,) f32."""
    B, L1, H = x.shape
    _, L2, _ = y.shape

    if batch_tile is None:
        batch_tile = next(c for c in (8, 4, 2, 1) if B % c == 0)
    if l1_tile is None:
        l1_tile = L1
    assert B % batch_tile == 0, "batch_tile must divide batch"
    assert L1 % l1_tile == 0, "l1_tile must divide len1"
    assert l1_tile == L1 or l1_tile % 8 == 0, "l1_tile must be a multiple of 8"

    mask = y_mask.astype(jnp.int32).reshape(B, 1, L2)
    w_t = weight.T.astype(jnp.bfloat16)          # bf16 MXU operand, halves weight footprint
    b2d = bias.astype(jnp.float32).reshape(1, H)

    Bt, tl = batch_tile, l1_tile
    grid = (B // Bt, L1 // tl)                   # L1-tile axis innermost (y_proj scratch reuse)

    return pl.pallas_call(
        _seq_attn_kernel,
        out_shape=jax.ShapeDtypeStruct((B, L1, H), jnp.float32),
        grid_spec=pltpu.PrefetchScalarGridSpec(
            num_scalar_prefetch=0,
            grid=grid,
            in_specs=[
                pl.BlockSpec((Bt, tl, H), lambda bi, li: (bi, li, 0)),   # x tile
                pl.BlockSpec((Bt, L2, H), lambda bi, li: (bi, 0, 0)),    # y (resident across li)
                pl.BlockSpec((Bt, 1, L2), lambda bi, li: (bi, 0, 0)),    # mask
                pl.BlockSpec((H, H), lambda bi, li: (0, 0)),             # w_t (bf16)
                pl.BlockSpec((1, H), lambda bi, li: (0, 0)),             # bias
            ],
            out_specs=pl.BlockSpec((Bt, tl, H), lambda bi, li: (bi, li, 0)),
            scratch_shapes=[pltpu.VMEM((Bt, L2, H), jnp.bfloat16)],      # cached y_proj
        ),
        compiler_params=pltpu.CompilerParams(
            dimension_semantics=("parallel", "arbitrary"),
            vmem_limit_bytes=vmem_limit_bytes),
    )(x, y, mask, w_t, b2d)


def _reference_mixed(x, y, y_mask, weight, bias):
    """Same math as the PyTorch module, with the same bf16-in / f32-acc precision
    choices as the kernel (so the comparison isolates kernel correctness)."""
    H = x.shape[-1]
    wt = weight.T.astype(jnp.bfloat16)

    def proj(t):
        t2 = t.reshape(-1, H).astype(jnp.bfloat16)
        p = jnp.dot(t2, wt, preferred_element_type=jnp.float32) + bias
        return jnp.maximum(p, 0.0).reshape(t.shape).astype(jnp.bfloat16)

    xp, yp = proj(x), proj(y)
    scores = jnp.einsum("bih,bjh->bij", xp, yp, preferred_element_type=jnp.float32)
    scores = jnp.where(y_mask[:, None, :] > 0, jnp.float32(-1e30), scores)
    alpha = jax.nn.softmax(scores, axis=-1)
    return jnp.einsum("bij,bjh->bih", alpha.astype(jnp.bfloat16),
                      y.astype(jnp.bfloat16), preferred_element_type=jnp.float32)


if __name__ == "__main__":
    key = jax.random.PRNGKey(0)
    # Small but TPU-friendly demo shapes: H = 128 keeps the output lane-dense,
    # (B=8, Bt=4, L1=16, tl=8) gives a (2, 2) grid exercising both axes.
    B, L1, L2, H = 8, 16, 8, 128

    kx, ky, kw, kb = jax.random.split(key, 4)
    x = jax.random.normal(kx, (B, L1, H), dtype=jnp.float32)
    y = jax.random.normal(ky, (B, L2, H), dtype=jnp.float32)
    # Mask out the last two positions of y in each batch (1 = masked).
    y_mask = jnp.zeros((B, L2), dtype=jnp.int32).at[:, -2:].set(1)

    # Deterministic synthetic parameters for nn.Linear(H, H).
    weight = jax.random.normal(kw, (H, H), dtype=jnp.float32) * (1.0 / jnp.sqrt(H))
    bias = jax.random.normal(kb, (H,), dtype=jnp.float32) * 0.1

    out = seq_attn_match(x, y, y_mask, weight, bias, batch_tile=4, l1_tile=8)
    out = jax.block_until_ready(out)

    ref = _reference_mixed(x, y, y_mask, weight, bias)
    assert out.shape == (B, L1, H)
    assert bool(jnp.all(jnp.isfinite(out))), "non-finite values in output"
    assert jnp.allclose(out, ref, atol=2e-2, rtol=2e-2), "mismatch vs reference"

    print("KERNEL_OK")
</pallas_src>

<mosaic_0001>
module attributes {stable_mosaic.version = 11 : i64} {
  func.func @_seq_attn_kernel(%arg0: i32, %arg1: i32, %arg2: memref<4x8x128xf32, #tpu.memory_space<vmem>>, %arg3: memref<4x8x128xf32, #tpu.memory_space<vmem>>, %arg4: memref<4x1x8xi32, #tpu.memory_space<vmem>>, %arg5: memref<128x128xbf16, #tpu.memory_space<vmem>>, %arg6: memref<1x128xf32, #tpu.memory_space<vmem>>, %arg7: memref<4x8x128xf32, #tpu.memory_space<vmem>>, %arg8: memref<4x8x128xbf16, #tpu.memory_space<vmem>>) attributes {dimension_semantics = [#tpu.dimension_semantics<parallel>, #tpu.dimension_semantics<arbitrary>], iteration_bounds = array<i64: 2, 2>, scalar_prefetch = 0 : i64, scratch_operands = 1 : i64, tpu.core_type = #tpu.core_type<tc>, window_params = [{transform_indices = @transform_0, window_bounds = array<i64: 4, 8, 128>}, {transform_indices = @transform_1, window_bounds = array<i64: 4, 8, 128>}, {transform_indices = @transform_2, window_bounds = array<i64: 4, 1, 8>}, {pipeline_mode = #tpu.pipeline_mode<synchronous>, transform_indices = @transform_3, window_bounds = array<i64: 128, 128>}, {pipeline_mode = #tpu.pipeline_mode<synchronous>, transform_indices = @transform_4, window_bounds = array<i64: 1, 128>}, {transform_indices = @transform_5, window_bounds = array<i64: 4, 8, 128>}]} {
    %c0 = arith.constant 0 : index
    %c0_0 = arith.constant 0 : index
    %0 = vector.load %arg5[%c0, %c0_0] : memref<128x128xbf16, #tpu.memory_space<vmem>>, vector<128x128xbf16>
    %c0_1 = arith.constant 0 : index
    %c0_2 = arith.constant 0 : index
    %1 = vector.load %arg6[%c0_1, %c0_2] : memref<1x128xf32, #tpu.memory_space<vmem>>, vector<1x128xf32>
    %c0_i32 = arith.constant 0 : i32
    %2 = arith.cmpi eq, %arg1, %c0_i32 : i32
    %3 = arith.extui %2 : i1 to i32
    %c0_i32_3 = arith.constant 0 : i32
    %4 = arith.cmpi ne, %3, %c0_i32_3 : i32
    scf.if %4 {
      %c0_26 = arith.constant 0 : index
      %c0_27 = arith.constant 0 : index
      %c0_28 = arith.constant 0 : index
      %39 = vector.load %arg3[%c0_26, %c0_27, %c0_28] : memref<4x8x128xf32, #tpu.memory_space<vmem>>, vector<4x8x128xf32>
      %40 = vector.shape_cast %39 : vector<4x8x128xf32> to vector<32x128xf32>
      %41 = arith.truncf %40 : vector<32x128xf32> to vector<32x128xbf16>
      %cst_29 = arith.constant dense<0.000000e+00> : vector<32x128xf32>
      %42 = tpu.matmul %41, %0, %cst_29 {dimension_numbers = #tpu.dot_dimension_numbers<[1], [0], [0], [1], [0, 0, 1, 1], [], []>} : vector<32x128xbf16>, vector<128x128xbf16>, vector<32x128xf32> -> vector<32x128xf32>
      %43 = vector.broadcast %1 : vector<1x128xf32> to vector<32x128xf32>
      %44 = arith.addf %42, %43 : vector<32x128xf32>
      %cst_30 = arith.constant 0.000000e+00 : f32
      %45 = vector.broadcast %cst_30 : f32 to vector<32x128xf32>
      %46 = arith.maximumf %44, %45 : vector<32x128xf32>
      %47 = vector.shape_cast %46 : vector<32x128xf32> to vector<4x8x128xf32>
      %48 = arith.truncf %47 : vector<4x8x128xf32> to vector<4x8x128xbf16>
      %c0_31 = arith.constant 0 : index
      %c0_32 = arith.constant 0 : index
      %c0_33 = arith.constant 0 : index
      %49 = vector.load %arg8[%c0_31, %c0_32, %c0_33] : memref<4x8x128xbf16, #tpu.memory_space<vmem>>, vector<4x8x128xbf16>
      tpu.vector_store %arg8[%c0_31, %c0_32, %c0_33], %48 {strides = array<i32>} : memref<4x8x128xbf16, #tpu.memory_space<vmem>>, vector<4x8x128xbf16>,
    } else {
    }
    %c0_4 = arith.constant 0 : index
    %c0_5 = arith.constant 0 : index
    %c0_6 = arith.constant 0 : index
    %5 = vector.load %arg2[%c0_4, %c0_5, %c0_6] : memref<4x8x128xf32, #tpu.memory_space<vmem>>, vector<4x8x128xf32>
    %6 = vector.shape_cast %5 : vector<4x8x128xf32> to vector<32x128xf32>
    %7 = arith.truncf %6 : vector<32x128xf32> to vector<32x128xbf16>
    %cst = arith.constant dense<0.000000e+00> : vector<32x128xf32>
    %8 = tpu.matmul %7, %0, %cst {dimension_numbers = #tpu.dot_dimension_numbers<[1], [0], [0], [1], [0, 0, 1, 1], [], []>} : vector<32x128xbf16>, vector<128x128xbf16>, vector<32x128xf32> -> vector<32x128xf32>
    %9 = vector.broadcast %1 : vector<1x128xf32> to vector<32x128xf32>
    %10 = arith.addf %8, %9 : vector<32x128xf32>
    %cst_7 = arith.constant 0.000000e+00 : f32
    %11 = vector.broadcast %cst_7 : f32 to vector<32x128xf32>
    %12 = arith.maximumf %10, %11 : vector<32x128xf32>
    %13 = vector.shape_cast %12 : vector<32x128xf32> to vector<4x8x128xf32>
    %14 = arith.truncf %13 : vector<4x8x128xf32> to vector<4x8x128xbf16>
    %c0_8 = arith.constant 0 : index
    %c0_9 = arith.constant 0 : index
    %c0_10 = arith.constant 0 : index
    %15 = vector.load %arg8[%c0_8, %c0_9, %c0_10] : memref<4x8x128xbf16, #tpu.memory_space<vmem>>, vector<4x8x128xbf16>
    %cst_11 = arith.constant dense<0.000000e+00> : vector<4x8x8xf32>
    %16 = tpu.matmul %14, %15, %cst_11 {dimension_numbers = #tpu.dot_dimension_numbers<[2], [2], [1], [1], [0, 0, 0, 1, 1, 1], [0], [0]>} : vector<4x8x128xbf16>, vector<4x8x128xbf16>, vector<4x8x8xf32> -> vector<4x8x8xf32>
    %c0_12 = arith.constant 0 : index
    %c0_13 = arith.constant 0 : index
    %c0_14 = arith.constant 0 : index
    %17 = vector.load %arg4[%c0_12, %c0_13, %c0_14] : memref<4x1x8xi32, #tpu.memory_space<vmem>>, vector<4x1x8xi32>
    %c0_i32_15 = arith.constant 0 : i32
    %18 = vector.broadcast %c0_i32_15 : i32 to vector<4x1x8xi32>
    %19 = arith.cmpi sgt, %17, %18 : vector<4x1x8xi32>
    %cst_16 = arith.constant -1.000000e+30 : f32
    %20 = vector.shape_cast %19 : vector<4x1x8xi1> to vector<4x1x8xi1>
    %21 = vector.broadcast %20 : vector<4x1x8xi1> to vector<4x8x8xi1>
    %22 = vector.broadcast %cst_16 : f32 to vector<4x8x8xf32>
    %23 = arith.select %21, %22, %16 : vector<4x8x8xi1>, vector<4x8x8xf32>
    %cst_17 = arith.constant dense<0xFF800000> : vector<4x8xf32>
    %24 = vector.multi_reduction <maximumf>, %23, %cst_17 [2] : vector<4x8x8xf32> to vector<4x8xf32>
    %25 = vector.shape_cast %24 : vector<4x8xf32> to vector<4x8x1xf32>
    %26 = vector.broadcast %25 : vector<4x8x1xf32> to vector<4x8x8xf32>
    %27 = arith.subf %23, %26 : vector<4x8x8xf32>
    %28 = math.exp %27 : vector<4x8x8xf32>
    %cst_18 = arith.constant dense<0.000000e+00> : vector<4x8xf32>
    %29 = vector.multi_reduction <add>, %28, %cst_18 [2] : vector<4x8x8xf32> to vector<4x8xf32>
    %30 = vector.shape_cast %29 : vector<4x8xf32> to vector<4x8x1xf32>
    %31 = tpu.reciprocal %30 {approx = true} : vector<4x8x1xf32> -> vector<4x8x1xf32>
    %32 = vector.broadcast %31 : vector<4x8x1xf32> to vector<4x8x8xf32>
    %33 = arith.mulf %28, %32 : vector<4x8x8xf32>
    %34 = arith.truncf %33 : vector<4x8x8xf32> to vector<4x8x8xbf16>
    %c0_19 = arith.constant 0 : index
    %c0_20 = arith.constant 0 : index
    %c0_21 = arith.constant 0 : index
    %35 = vector.load %arg3[%c0_19, %c0_20, %c0_21] : memref<4x8x128xf32, #tpu.memory_space<vmem>>, vector<4x8x128xf32>
    %36 = arith.truncf %35 : vector<4x8x128xf32> to vector<4x8x128xbf16>
    %cst_22 = arith.constant dense<0.000000e+00> : vector<4x8x128xf32>
    %37 = tpu.matmul %34, %36, %cst_22 {dimension_numbers = #tpu.dot_dimension_numbers<[2], [1], [1], [2], [0, 0, 0, 1, 1, 2], [0], [0]>} : vector<4x8x8xbf16>, vector<4x8x128xbf16>, vector<4x8x128xf32> -> vector<4x8x128xf32>
    %c0_23 = arith.constant 0 : index
    %c0_24 = arith.constant 0 : index
    %c0_25 = arith.constant 0 : index
    %38 = vector.load %arg7[%c0_23, %c0_24, %c0_25] : memref<4x8x128xf32, #tpu.memory_space<vmem>>, vector<4x8x128xf32>
    tpu.vector_store %arg7[%c0_23, %c0_24, %c0_25], %37 {strides = array<i32>} : memref<4x8x128xf32, #tpu.memory_space<vmem>>, vector<4x8x128xf32>,
    return
  }
  func.func @transform_0(%arg0: i32, %arg1: i32) -> (i32, i32, i32) {
    %c0_i32 = arith.constant 0 : i32
    %c0_i32_0 = arith.constant 0 : i32
    return %arg0, %arg1, %c0_i32 : i32, i32, i32
  }
  func.func @transform_1(%arg0: i32, %arg1: i32) -> (i32, i32, i32) {
    %c0_i32 = arith.constant 0 : i32
    %c0_i32_0 = arith.constant 0 : i32
    %c0_i32_1 = arith.constant 0 : i32
    return %arg0, %c0_i32, %c0_i32_0 : i32, i32, i32
  }
  func.func @transform_2(%arg0: i32, %arg1: i32) -> (i32, i32, i32) {
    %c0_i32 = arith.constant 0 : i32
    %c0_i32_0 = arith.constant 0 : i32
    %c0_i32_1 = arith.constant 0 : i32
    return %arg0, %c0_i32, %c0_i32_0 : i32, i32, i32
  }
  func.func @transform_3(%arg0: i32, %arg1: i32) -> (i32, i32) {
    %c0_i32 = arith.constant 0 : i32
    %c0_i32_0 = arith.constant 0 : i32
    %c0_i32_1 = arith.constant 0 : i32
    return %c0_i32, %c0_i32_0 : i32, i32
  }
  func.func @transform_4(%arg0: i32, %arg1: i32) -> (i32, i32) {
    %c0_i32 = arith.constant 0 : i32
    %c0_i32_0 = arith.constant 0 : i32
    %c0_i32_1 = arith.constant 0 : i32
    return %c0_i32, %c0_i32_0 : i32, i32
  }
  func.func @transform_5(%arg0: i32, %arg1: i32) -> (i32, i32, i32) {
    %c0_i32 = arith.constant 0 : i32
    %c0_i32_0 = arith.constant 0 : i32
    return %arg0, %arg1, %c0_i32 : i32, i32, i32
  }
}

</mosaic_0001>

<bundles_post_ra>
// kernel: tpu_custom_call.1
= control target key start
LH: loop header
LB: loop body
LE: loop exit
PB: predicated region body
PF: predicated region fallthrough
CT: control target
= control target key end

     0   :  { %s2393_s0 = inlined_call_operand.hbm [shape: f32[8,16,128], index: 0, kind: input, shape index: {}]   ;;  %s2394_s1 = inlined_call_operand.hbm [shape: f32[8,8,128], index: 1, kind: input, shape index: {}]   ;;  %s2395_s2 = inlined_call_operand.hbm [shape: s32[8,1,8], index: 2, kind: input, shape index: {}]   ;;  %s2396_s3 = inlined_call_operand.hbm [shape: bf16[128,128], index: 3, kind: input, shape index: {}]   ;;  %s2397_s4 = inlined_call_operand.vmem [shape: f32[1,128], index: 4, kind: input, shape index: {}]   ;;  %s2398_s5 = inlined_call_operand.hbm [shape: f32[8,16,128], index: 5, kind: output, shape index: {}]  }
   0x1   :  { %2424 = sst [smem:[#allocation26_spill]] %s2394_s1 }
   0x2   :  { %2425 = sst [smem:[#allocation27_spill]] %s2396_s3 }
   0x3   :  { %2426 = sst [smem:[#allocation28_spill]] %s2397_s4 }
   0x4   :  { %2427 = sst [smem:[#allocation29_spill]] %s2398_s5 }
   0x5   :  { %10 = vsyncpa [#allocation4], 0 }
   0x6   :  { %12 = vsyncpa [#allocation4 + $0x1], 0 }
   0x7   :  { %13 = vsyncpa [#allocation7], 0 }
   0x8   :  { %15 = vsyncpa [#allocation7 + $0x1], 0 }
   0x9   :  { %16 = vsyncpa [#allocation10], 0 }
   0xa   :  { %17 = vsyncpa [#allocation5], 0 }
   0xb   :  { %19 = vsyncpa [#allocation5 + $0x1], 0  ;;  %s1857_s18 = smov 0   ;;  %s1859_s19 = smov 0  }
   0xc   :  { %s1861_s20 = smov 0   ;;  %s1863_s21 = smov 0  }
   0xd   :  { %s1865_s22 = smov 0   ;;  %s1867_s23 = smov 0  }
   0xe   :  { %s1869_s24 = smov 0   ;;  %s1871_s25 = smov 0  }
   0xf   :  { %s1873_s26 = smov 0   ;;  %s1875_s27 = smov 0  }
  0x10   :  { %s1877_s28 = smov 0  }
  0x11 LB: > { %2428 = sst [smem:[#allocation16_spill]] %s1771_s19  ;;  %p2407_p0 = scmp.eq.s32.totalorder %s1807_s28, 0  ;;  %s1807_s28 = sphi %s1877_s28, %s25_s28   ;;  %s1803_s27 = sphi %s1875_s27, %s2489_s27   ;;  %s1799_s26 = sphi %s1873_s26, %s2488_s26   ;;  %s1795_s25 = sphi %s1871_s25, %s2487_s25   ;;  %s1791_s24 = sphi %s1869_s24, %s2486_s24   ;;  %s1787_s23 = sphi %s1867_s23, %s2485_s23   ;;  %s1783_s22 = sphi %s1865_s22, %s2484_s22   ;;  %s1779_s21 = sphi %s1863_s21, %s2483_s21   ;;  %s1775_s20 = sphi %s1861_s20, %s2482_s20   ;;  %s1771_s19 = sphi %s1859_s19, %s2481_s19   ;;  %s1767_s18 = sphi %s1857_s18, %s2478_s18  }
  0x12   : > { %2429 = sst [smem:[#allocation17_spill]] %s1779_s21  ;;  %p79_p1 = scmp.ne.s32.totalorder %s1775_s20, %s1771_s19 }
  0x13   : > { %2430 = sst [smem:[#allocation18_spill]] %s1791_s24  ;;  %p2399_p2 = scmp.lt.s32.totalorder %s1807_s28, 4 }
  0x14   : > { %2431 = sst [smem:[#allocation19_spill]] %s1795_s25  ;;  %p81_p3 = por %p79_p1, %p2407_p0 }
  0x15   : > { %s244_s30 = sand.u32 1, %s1807_s28   ;;  %s246_s6 = sand.u32 1, %s1775_s20  }
  0x16   : > { %s1229_s7 = sshll.u32 %s246_s6, 5  ;;  %s1269_s8 = sshll.u32 %s1803_s27, 9 }
  0x17   : > { %s2432_s1 = sld [smem:[#allocation26_spill]]  ;;  %s248_s12 = scalar_lea.vmem [#allocation6], %s1229_s7 }
  0x18   : > { %s255_s13 = sshll.u32 %s248_s12, 4  ;;  %p1931_p4 = pnand %p2399_p2, %p81_p3  ;;  %s1927_s13 = int_to_ptr.vmem [resolvable:$true] %s255_s13 }
  0x19   : > { %s1935_s15 = sshll.u32 %s246_s6, 2  ;;  %s1937_s16 = scalar_lea.sflag [#allocation7], %s244_s30 }
  0x1a   : > { %s2433_s14 = scalar_select %p1931_p4, 1, 0 }
  0x1b   : > { %p2400_p6 = pneg %p1931_p4 }
  0x1d   : > { %s1925_s11 = scalar_lea.hbm %s2432_s1, %s1269_s8  ;;  %s1564_s9 = scalar_lea.hbm %s2432_s1, 1024 }
  0x1e   : > { %s1559_s17 = scalar_lea.hbm %s1925_s11, 512  ;;  %p1565_p9 = scmp.lt.u32.totalorder %s1925_s11, %s2432_s1 }
  0x1f   : > { %p1560_p5 = scmp.ne.s32.totalorder %s1925_s11, %s1559_s17  ;;  %p1566_p10 = scmp.lt.u32.totalorder %s1564_s9, %s1559_s17 }
  0x20   : > { %p1568_p12 = scmp.lt.u32.totalorder %s1559_s17, %s1925_s11 }
  0x21   : > { %p1562_p7 = pnand %p2400_p6, %p1560_p5  ;;  %p1567_p11 = por %p1566_p10, %p1565_p9 }
  0x23   : > { %p1563_p8 = pneg %p1562_p7  ;;  %p1569_p13 = por %p1568_p12, %p1567_p11 }
  0x25   : > { %p1570_p1 = pnand %p1569_p13, %p1563_p8 }
  0x27   : > { %1573 = shalt.err (!%p1570_p1)
}
  0x28   : > { %s1574_s30 = scalar_lea.vmem %s1927_s13, 512  ;;  %s1809_s6 = smov [#allocation6]  }
  0x29   : > { %p1575_p3 = scmp.ne.s32.totalorder %s1927_s13, %s1574_s30  ;;  %s1579_s7 = sshll.u32 %s1809_s6, 4  ;;  %s1580_s7 = int_to_ptr.vmem [resolvable:$false] %s1579_s7 }
  0x2a   : > { %s1581_s8 = scalar_lea.vmem %s1580_s7, 1024  ;;  %p1582_p2 = scmp.lt.s32.totalorder %s1927_s13, %s1580_s7 }
  0x2b   : > { %p1577_p5 = pnand %p1575_p3, %p2400_p6  ;;  %p1583_p9 = scmp.lt.s32.totalorder %s1581_s8, %s1574_s30 }
  0x2d   : > { %p1578_p7 = pneg %p1577_p5  ;;  %p1584_p10 = por %p1583_p9, %p1582_p2 }
  0x2f   : > { %p1585_p11 = pnand %p1584_p10, %p1578_p7 }
  0x31   : > { %1588 = shalt.err (!%p1585_p11)
}
  0x32   : > { %s2401_s17 = smov 128   ;;  %s2402_s9 = smov 8  }
  0x33   : > { %1429 = dma.hbm_to_vmem [thread:$0]  (!%p1931_p4), %s1925_s11, 512, %s1927_s13, %s1937_s16, %s2401_s17, %s2401_s17, %s2402_s9  }
  0x34   : > { %s269_s10 = scalar_lea.vmem [#allocation8], %s1935_s15  ;;  %s1972_s30 = sadd.s32 4294967295, %s1807_s28  }
  0x35   : > { %s1969_s12 = sshll.u32 %s269_s10, 4  ;;  %2434 = sst [smem:[#allocation20_spill]] %s1972_s30  ;;  %s2124_s12 = int_to_ptr.vmem [resolvable:$true] %s1969_s12 }
  0x36   : > { %s1221_s6 = sadd.s32 4294967294, %s1807_s28   ;;  %p59_p2 = scmp.ne.s32.totalorder %s1783_s22, %s1779_s21 }
  0x37   : > { %p2406_p8 = scmp.eq.s32.totalorder %s1972_s30, 0  ;;  %p85_p12 = scmp.ne.s32.totalorder %s1771_s19, %s1767_s18 }
  0x38   : > { %p185_p3 = scmp.eq.s32.totalorder %s1221_s6, 3  ;;  %p1222_p7 = scmp.ge.s32.totalorder %s1807_s28, 1 }
  0x39   : > { %p1983_p1 = por %p2406_p8, %p59_p2  ;;  %p1989_p5 = por %p85_p12, %p2406_p8 }
  0x3a   : > { %p1994_p9 = por %p185_p3, %p59_p2  ;;  %p192_p10 = scmp.lt.s32.totalorder %s1807_s28, 5 }
  0x3b   : > { %s2435_s7 = scalar_select %p1983_p1, 1, 0 }
  0x3c   : > { %s2437_s11 = scalar_select %p1989_p5, 1, 0 }
  0x3d   : > { %2436 = sst [smem:[#allocation21_spill]] %s2435_s7  ;;  %p1999_p11 = pnand %p1222_p7, %p192_p10 }
  0x3e   : > { %2438 = sst [smem:[#allocation22_spill]] %s2437_s11  ;;  %s1812_s15 = smov [#allocation9]  }
  0x3f   : > { %s2439_s13 = scalar_select %p1994_p9, 1, 0 }
  0x40   : > { %s2441_s18 = scalar_select %p1999_p11, 1, 0 }
  0x41   : > { %2440 = sst [smem:[#allocation23_spill]] %s2439_s13  ;;  %s204_s8 = sshll.u32 %s1812_s15, 4  ;;  %s205_s8 = int_to_ptr.vmem [resolvable:$true] %s204_s8 }
  0x42   : > { %p1419_p6 = pneg %p1999_p11  ;;  %s34_s6 = sadd.s32 1, %s1799_s26 }
  0x43   : > { %p2012_p2 = scmp.ge.s32.totalorder %s34_s6, 2  ;;  %s2444_s3 = sld [smem:[#allocation27_spill]] }
  0x44   : > { %p2007_p12 = pnand %p1419_p6, %p2406_p8 }
  0x45   : > { %s2443_s17 = scalar_select %p2012_p2, 1, 0 }
  0x46   : > { %p1591_p7 = pneg %p2007_p12 }
  0x49   : > { %s1589_s1 = scalar_lea.hbm %s2444_s3, 1024 }
  0x4a   : > { %p1590_p3 = scmp.ne.s32.totalorder %s2444_s3, %s1589_s1  ;;  %p1596_p8 = scmp.lt.u32.totalorder %s1589_s1, %s2444_s3 }
  0x4c   : > { %p1592_p6 = pnand %p1591_p7, %p1590_p3 }
  0x4e   : > { %p1593_p10 = pneg %p1592_p6 }
  0x50   : > { %p1598_p13 = pnand %p1596_p8, %p1593_p10 }
  0x52   : > { %1601 = shalt.err (!%p1598_p13)
}
  0x53   : > { %s1602_s25 = scalar_lea.vmem %s205_s8, 1024  ;;  %p1610_p1 = scmp.lt.s32.totalorder %s205_s8, %s205_s8 }
  0x54   : > { %p1603_p0 = scmp.ne.s32.totalorder %s205_s8, %s1602_s25  ;;  %p1611_p11 = scmp.lt.s32.totalorder %s1602_s25, %s1602_s25 }
  0x56   : > { %p1605_p9 = pnand %p1603_p0, %p1591_p7  ;;  %p1612_p4 = por %p1611_p11, %p1610_p1 }
  0x58   : > { %p1606_p5 = pneg %p1605_p9 }
  0x5a   : > { %p1613_p2 = pnand %p1612_p4, %p1606_p5 }
  0x5c   : > { %1616 = shalt.err (!%p1613_p2)
}
  0x5d   : > { %s1813_s29 = smov 64   ;;  %s1814_s1 = smov 4  }
  0x5e   : > { %1422 = dma.hbm_to_vmem [thread:$0]  (!%p2007_p12), %s2444_s3, 1024, %s205_s8, [#allocation10], %s1813_s29, %s1813_s29, %s1814_s1  }
  0x5f   : > { %p2445_p0 = scmp.ne.s32.totalorder %s2443_s17, 0  ;;  %s37_s25 = sadd.s32 1, %s1803_s27 }
  0x60   : > { %s46_s9 = sadd.s32 1, %s1787_s23  ;;  %p53_p4 = scmp.ne.s32.totalorder %s1787_s23, %s1783_s22 }
  0x61   : > { %s2491_s6 = smov (%p2445_p0, %s34_s6), 0  ;;  %s2493_s25 = smov (!%p2445_p0, %s37_s25), %s1803_s27 }
  0x62   : > { %2446 = sst [smem:[#allocation24_spill]] %s2491_s6  ;;  %s42_s13 = ssub.s32 %s1799_s26, %s2491_s6 }
  0x63   : > { %p39_p8 = scmp.ge.s32.totalorder %s2493_s25, 2  ;;  %s221_s10 = sand.u32 1, %s1787_s23  }
  0x64   : > { %p2447_p13 = scmp.eq.s32.totalorder %s1807_s28, 0  ;;  %p2449_p5 = scmp.eq.s32.totalorder %s1972_s30, 3 }
  0x65   : > { %s2495_s25 = smov (%p39_p8, %s2493_s25), 0  ;;  %s1225_s17 = sshll.u32 %s221_s10, 5 }
  0x66   : > { %p2048_p1 = por %p2447_p13, %p53_p4  ;;  %p2054_p9 = por %p2449_p5, %p53_p4 }
  0x67   : > { %s41_s29 = ssub.s32 %s1803_s27, %s2495_s25  ;;  %s1268_s5 = sshll.u32 %s1803_s27, 3 }
  0x68   : > { %s2450_s15 = scalar_select %p2054_p9, 1, 0 }
  0x69   : > { %s43_s1 = sor.u32 %s42_s13, %s41_s29  ;;  %p70_p11 = scmp.eq.s32.totalorder %s41_s29, 0 }
  0x6a   : > { %2451 = sst [smem:[#allocation25_spill]] %s2450_s15  ;;  %p44_p12 = scmp.eq.s32.totalorder %s43_s1, 0 }
  0x6b   : > { %s2452_s21 = sadd.s32 1, %s1775_s20  ;;  %s231_s24 = sadd.s32 %s1799_s26, %s1268_s5 }
  0x6c   : > { %s2066_s3 = scalar_select %p70_p11, %s1775_s20, %s2452_s21  }
  0x6d   : > { %s2069_s6 = scalar_select %p44_p12, %s1787_s23, %s46_s9  }
  0x6e   : > { %s225_s4 = scalar_lea.vmem [#allocation3], %s1225_s17  ;;  %s1228_s11 = sshll.u32 %s231_s24, 7 }
  0x6f   : > { %s234_s15 = sshll.u32 %s225_s4, 4  ;;  %s2077_s7 = scalar_lea.hbm %s2393_s0, %s1228_s11  ;;  %s2072_s15 = int_to_ptr.vmem [resolvable:$true] %s234_s15 }
  0x70   : > { %p2453_p2 = scmp.lt.s32.totalorder %s1807_s28, 4  ;;  %s1270_s4 = sshll.u32 %s1803_s27, 6 }
  0x71   : > { %s2091_s17 = scalar_lea.hbm %s2395_s2, %s1270_s4  ;;  %s2093_s19 = scalar_lea.sflag [#allocation4], %s221_s10 }
  0x72   : > { %p2083_p3 = pnand %p2453_p2, %p2048_p1  ;;  %s1617_s30 = scalar_lea.hbm %s2077_s7, 512 }
  0x73   : > { %p1618_p7 = scmp.ne.s32.totalorder %s2077_s7, %s1617_s30  ;;  %s1622_s29 = scalar_lea.hbm %s2393_s0, 2048 }
  0x74   : > { %p1619_p6 = pneg %p2083_p3  ;;  %p1623_p4 = scmp.lt.u32.totalorder %s2077_s7, %s2393_s0 }
  0x75   : > { %p1624_p8 = scmp.lt.u32.totalorder %s1622_s29, %s1617_s30  ;;  %p1626_p1 = scmp.lt.u32.totalorder %s1617_s30, %s2077_s7 }
  0x76   : > { %p1620_p10 = pnand %p1619_p6, %p1618_p7 }
  0x77   : > { %p1625_p13 = por %p1624_p8, %p1623_p4 }
  0x78   : > { %p1621_p0 = pneg %p1620_p10 }
  0x79   : > { %p1627_p5 = por %p1626_p1, %p1625_p13 }
  0x7b   : > { %p1628_p11 = pnand %p1627_p5, %p1621_p0 }
  0x7d   : > { %1631 = shalt.err (!%p1628_p11)
}
  0x7e   : > { %s1632_s10 = scalar_lea.vmem %s2072_s15, 512  ;;  %s1815_s21 = smov [#allocation3]  }
  0x7f   : > { %p1633_p12 = scmp.ne.s32.totalorder %s2072_s15, %s1632_s10  ;;  %s1637_s4 = sshll.u32 %s1815_s21, 4  ;;  %s1638_s4 = int_to_ptr.vmem [resolvable:$false] %s1637_s4 }
  0x80   : > { %s1639_s24 = scalar_lea.vmem %s1638_s4, 1024  ;;  %p1640_p10 = scmp.lt.s32.totalorder %s2072_s15, %s1638_s4 }
  0x81   : > { %p1635_p2 = pnand %p1633_p12, %p1619_p6  ;;  %p1641_p4 = scmp.lt.s32.totalorder %s1639_s24, %s1632_s10 }
  0x83   : > { %p1636_p7 = pneg %p1635_p2  ;;  %p1642_p8 = por %p1641_p4, %p1640_p10 }
  0x85   : > { %p1643_p13 = pnand %p1642_p8, %p1636_p7 }
  0x87   : > { %1646 = shalt.err (!%p1643_p13)
}
  0x88   : > { %s1816_s13 = smov 256   ;;  %s2455_s30 = smov 8  }
  0x89   : > { %s2456_s11 = smov 128   ;;  %s1647_s8 = scalar_lea.hbm %s2091_s17, 64 }
  0x8a   : > { %1426 = dma.hbm_to_vmem [thread:$0]  (!%p2083_p3), %s2077_s7, 512, %s2072_s15, %s2093_s19, %s1816_s13, %s2456_s11, %s2455_s30  }
  0x8b   : > { %p1648_p6 = scmp.ne.s32.totalorder %s2091_s17, %s1647_s8  ;;  %p2457_p0 = scmp.ne.s32.totalorder %s2433_s14, 0 }
  0x8c   : > { %s1652_s1 = scalar_lea.hbm %s2395_s2, 128  ;;  %p1653_p12 = scmp.lt.u32.totalorder %s2091_s17, %s2395_s2 }
  0x8d   : > { %p2458_p1 = pneg %p2457_p0  ;;  %p1654_p2 = scmp.lt.u32.totalorder %s1652_s1, %s1647_s8 }
  0x8e   : > { %p1656_p10 = scmp.lt.u32.totalorder %s1647_s8, %s2091_s17 }
  0x8f   : > { %p1650_p5 = pnand %p1648_p6, %p2458_p1  ;;  %p1655_p7 = por %p1654_p2, %p1653_p12 }
  0x91   : > { %p1651_p11 = pneg %p1650_p5  ;;  %p1657_p3 = por %p1656_p10, %p1655_p7 }
  0x93   : > { %p1658_p4 = pnand %p1657_p3, %p1651_p11 }
  0x95   : > { %1661 = shalt.err (!%p1658_p4)
}
  0x96   : > { %s1662_s7 = scalar_lea.vmem %s2124_s12, 64  ;;  %p2459_p13 = pmov %p2458_p1 }
  0x97   : > { %p1663_p8 = scmp.ne.s32.totalorder %s2124_s12, %s1662_s7  ;;  %s1817_s15 = smov [#allocation8]  }
  0x98   : > { %s1667_s19 = sshll.u32 %s1817_s15, 4  ;;  %s1668_s19 = int_to_ptr.vmem [resolvable:$false] %s1667_s19 }
  0x99   : > { %p1665_p6 = pnand %p1663_p8, %p2459_p13  ;;  %s1669_s21 = scalar_lea.vmem %s1668_s19, 128 }
  0x9a   : > { %p1670_p5 = scmp.lt.s32.totalorder %s2124_s12, %s1668_s19  ;;  %p1671_p12 = scmp.lt.s32.totalorder %s1669_s21, %s1662_s7 }
  0x9b   : > { %p1666_p1 = pneg %p1665_p6 }
  0x9c   : > { %p1672_p2 = por %p1671_p12, %p1670_p5 }
  0x9e   : > { %p1673_p7 = pnand %p1672_p2, %p1666_p1 }
  0xa0   : > { %1676 = shalt.err (!%p1673_p7)
}
  0xa1   : > { %s1818_s4 = smov 16   ;;  %s1819_s24 = smov 1  }
  0xa2   : > { %1432 = dma.hbm_to_vmem [thread:$0]  (!%p2457_p0), %s2091_s17, 64, %s2124_s12, %s1937_s16, %s1818_s4, %s1818_s4, %s1819_s24  }
  0xa3   : > { %p2460_p11 = scmp.ne.s32.totalorder %s2441_s18, 0 }
  0xa4   : > { %s2461_s13 = sld [smem:[#allocation21_spill]] (!%p2460_p11)  ;;  %s2153_s30 = sand.u32 (!%p2460_p11), 1, %s1783_s22  }
  0xa5   : > { %288 = sbr.rel (%p2460_p11) target bundleno = 1491 (0x5d3), region = 40  ;;  %s1236_s11 = sshll.u32 (!%p2460_p11), %s2153_s30, 5 }
  0xa6   : > { %s291_s8 = scalar_lea.sflag (!%p2460_p11), [#allocation4], %s2153_s30  ;;  %s2159_s9 = scalar_lea.vmem (!%p2460_p11), [#allocation3], %s1236_s11 }
  0xaa   : > { %p2462_p10 = scmp.ne.s32.totalorder (!%p2460_p11), %s2461_s13, 0 }
  0xac   : > { %1750 = dma.done.wait (%p2462_p10), %s291_s8, 512  }
  0xad   : > { %1752 = vsyncadd (%p2462_p10), %s291_s8, 4294966784  ;;  %s2463_s14 = sld [smem:[#allocation20_spill]]  ;;  %s2464_s16 = sld [smem:[#allocation16_spill]] }
  0xae   : > { %s2465_s12 = sld [smem:[#allocation22_spill]] }
  0xb3   : > { %s299_s18 = sand.u32 1, %s2463_s14   ;;  %s301_s17 = sand.u32 1, %s2464_s16  }
  0xb4   : > { %s1237_s29 = sshll.u32 %s301_s17, 5  ;;  %s300_s1 = scalar_lea.sflag [#allocation7], %s299_s18 }
  0xb5   : > { %s2167_s5 = scalar_lea.vmem [#allocation6], %s1237_s29  ;;  %p2466_p0 = scmp.ne.s32.totalorder %s2465_s12, 0 }
  0xb7   : > { %1754 = dma.done.wait (%p2466_p0), %s300_s1, 576  }
  0xb8   : > { %1756 = vsyncadd (%p2466_p0), %s300_s1, 4294966720  ;;  %s1238_s10 = sshll.u32 %s301_s17, 2  ;;  %p2467_p3 = scmp.eq.s32.totalorder %s2463_s14, 0 }
  0xb9   : > { %s2173_s7 = scalar_lea.vmem [#allocation8], %s1238_s10 }
  0xba   : > { %1758 = dma.done.wait (%p2467_p3), [#allocation10], 1024   ;;  %p2468_p4 = pmov %p2467_p3 }
  0xbb   : > { %v2179_v0 = vld [vmem:[#allocation9] sm:$0xf]  ;;  %v2181_v1 = vld [vmem:[#allocation9 + $0x4] sm:$0xf]  ;;  %v2183_v2 = vld [vmem:[#allocation9 + $0x8] sm:$0xf] }
  0xbc   : > { %1760 = vsyncadd (%p2468_p4), [#allocation10], 4294966272  ;;  %v2185_v3 = vld [vmem:[#allocation9 + $0xc] sm:$0xf]  ;;  %v2187_v4 = vld [vmem:[#allocation9 + $0x10] sm:$0xf] }
  0xbd   : > { %v2189_v5 = vld [vmem:[#allocation9 + $0x14] sm:$0xf]  ;;  %v2191_v6 = vld [vmem:[#allocation9 + $0x18] sm:$0xf]  ;;  %v2193_v7 = vld [vmem:[#allocation9 + $0x1c] sm:$0xf] }
  0xbe   : > { %v2195_v8 = vld [vmem:[#allocation9 + $0x20] sm:$0xf]  ;;  %v2197_v9 = vld [vmem:[#allocation9 + $0x24] sm:$0xf]  ;;  %v2199_v10 = vld [vmem:[#allocation9 + $0x28] sm:$0xf] }
  0xbf   : > { %v2201_v11 = vld [vmem:[#allocation9 + $0x2c] sm:$0xf]  ;;  %v2203_v12 = vld [vmem:[#allocation9 + $0x30] sm:$0xf]  ;;  %v2205_v13 = vld [vmem:[#allocation9 + $0x34] sm:$0xf] }
  0xc0   : > { %v2207_v14 = vld [vmem:[#allocation9 + $0x38] sm:$0xf]  ;;  %v2209_v15 = vld [vmem:[#allocation9 + $0x3c] sm:$0xf]  ;;  %s2469_s21 = sld [smem:[#allocation28_spill]]  ;;  %s2218_s4 = scalar_lea.vmem [#allocation11], %s1236_s11 }
  0xc1   : > { %s2470_s24 = sld [smem:[#allocation18_spill]] }
  0xc6   : > { %v2214_v16 = vld [vmem:[%s2469_s21] sm:$0x1] }
  0xc7   : > { %p1241_p8 = scmp.ne.s32.totalorder %s2470_s24, 0 }
  0xc8   : > { %v1242_v17 = vcombine.low (!%p1241_p8), %v2179_v0, %v2181_v1  ;;  %v1243_v18 = vcombine.low (!%p1241_p8), %v2183_v2, %v2185_v3  ;;  %v379_v19 = vld [vmem:[%s2167_s5] sm:$0xff] (!%p1241_p8)  ;;  %v380_v20 = vld [vmem:[%s2167_s5 + $0x8] sm:$0xff] (!%p1241_p8)  ;;  %v1244_v22 = vcombine.low (!%p1241_p8), %v2187_v4, %v2189_v5  ;;  %v1245_v23 = vcombine.low (!%p1241_p8), %v2191_v6, %v2193_v7  ;;  %v381_v28 = vld [vmem:[%s2167_s5 + $0x10] sm:$0xff] (!%p1241_p8) }
  0xc9   : > { %378 = sbr.rel (%p1241_p8) target bundleno = 456 (0x1c8), region = 60  ;;  %v383_v21 = vpack.c.bf16 (!%p1241_p8), %v380_v20, %v379_v19  ;;  %v1246_v24 = vcombine.low (!%p1241_p8), %v2195_v8, %v2197_v9  ;;  %v1247_v25 = vcombine.low (!%p1241_p8), %v2199_v10, %v2201_v11  ;;  %v1248_v26 = vcombine.low (!%p1241_p8), %v2203_v12, %v2205_v13  ;;  %v382_v29 = vld [vmem:[%s2167_s5 + $0x18] sm:$0xff] (!%p1241_p8) }
  0xca   : > { %1319 = vmatprep.subr.bf16.mxu0 (!%p1241_p8), %v1242_v17  ;;  %v1249_v27 = vcombine.low (!%p1241_p8), %v2207_v14, %v2209_v15  ;;  %v384_v30 = vpack.c.bf16 (!%p1241_p8), %v382_v29, %v381_v28  ;;  %v386_v31 = vlaneseq (!%p1241_p8) }
  0xcb   : > { %1320 = vmatpush3.bf16.msra.mxu0 (!%p1241_p8), %v1242_v17  ;;  %1335 = vmatprep.mubr.bf16.mxu0 (!%p1241_p8), %v383_v21 }
  0xcc   : > { %1321 = vmatprep.subr.bf16.mxu0 (!%p1241_p8), %v1243_v18  ;;  %v387_v32 = vshrl.u32 (!%p1241_p8), %v386_v31, 7 }
  0xce   : > { %v388_v33 = vsub.s32 (!%p1241_p8), 0, %v387_v32 }
  0xcf   : > { %1322 = vmatpush3.bf16.msra.mxu0 (!%p1241_p8), %v1243_v18 }
  0xd0   : > { %1323 = vmatprep.subr.bf16.mxu0 %v1244_v22  ;;  %v389_v34 = vrot.slane %v2214_v16, %v388_v33 }
  0xd3   : > { %1324 = vmatpush3.bf16.msra.mxu0 %v1244_v22 }
  0xd4   : > { %1325 = vmatprep.subr.bf16.mxu0 %v1245_v23 }
  0xd7   : > { %1326 = vmatpush3.bf16.msra.mxu0 %v1245_v23 }
  0xd8   : > { %1327 = vmatprep.subr.bf16.mxu0 %v1246_v24 }
  0xdb   : > { %1328 = vmatpush3.bf16.msra.mxu0 %v1246_v24 }
  0xdc   : > { %1329 = vmatprep.subr.bf16.mxu0 %v1247_v25 }
  0xdf   : > { %1330 = vmatpush3.bf16.msra.mxu0 %v1247_v25 }
  0xe0   : > { %1331 = vmatprep.subr.bf16.mxu0 %v1248_v26 }
  0xe3   : > { %1332 = vmatpush3.bf16.msra.mxu0 %v1248_v26 }
  0xe4   : > { %1333 = vmatprep.subr.bf16.mxu0 %v1249_v27 }
  0xe7   : > { %1334 = vmatpush3.bf16.msra.mxu0 %v1249_v27 }
  0xea   : > { %1336 = vmatmul.mubr.bf16.vlgmr.msra.gmra.mrb[0].mxu0 %v384_v30 }
 0x1bd   : > { %v1337_v35 = vpop.f32.mrb[0].mxu0 }
 0x1be   : > { %v482_v36 = vadd.f32 %v1337_v35, %v389_v34  ;;  %v473_v37 = vpop.f32.mrb[1].mxu0 }
 0x1bf   : > { %v474_v38 = vadd.f32 %v473_v37, %v389_v34  ;;  %v1338_v39 = vpop.f32.mrb[2].mxu0 }
 0x1c0   : > { %v485_v40 = vadd.f32 %v1338_v39, %v389_v34  ;;  %v476_v41 = vpop.f32.mrb[3].mxu0  ;;  %v490_v43 = vmax.f32 %v482_v36, 0.0 }
 0x1c1   : > { %v477_v42 = vadd.f32 %v476_v41, %v389_v34  ;;  %v488_v45 = vmax.f32 %v474_v38, 0.0 }
 0x1c2   : > { %v491_v44 = vmax.f32 %v485_v40, 0.0 }
 0x1c3   : > { %v489_v46 = vmax.f32 %v477_v42, 0.0 }
 0x1c4   : > { %v1280_v47 = vpack.c.bf16 %v491_v44, %v490_v43 }
 0x1c5   : > { %v1275_v48 = vpack.c.bf16 %v489_v46, %v488_v45 }
 0x1c6   : > { %1282 = vst [vmem:[#allocation2 + $0x8] sm:$0xff] %v1280_v47  }
 0x1c7   : > { %1276 = vst [vmem:[#allocation2] sm:$0xff] %v1275_v48  }
 0x1c8 PF: > { %v1250_v49 = vcombine.low %v2179_v0, %v2181_v1  ;;  %v1251_v50 = vcombine.low %v2183_v2, %v2185_v3  ;;  %v500_v51 = vld [vmem:[%s2159_s9] sm:$0xff]  ;;  %v501_v52 = vld [vmem:[%s2159_s9 + $0x8] sm:$0xff]  ;;  %v1820_v54 = vmov 0.0   ;;  %v1252_v55 = vcombine.low %v2187_v4, %v2189_v5  ;;  %v502_v61 = vld [vmem:[%s2159_s9 + $0x10] sm:$0xff]  ;;  %s2471_s13 = sld [smem:[#allocation19_spill]]  ;;  %s2472_s11 = sld [smem:[#allocation18_spill]] }
 0x1c9   : > { %v504_v53 = vpack.c.bf16 %v501_v52, %v500_v51  ;;  %1359 = vmatprep.subr.bf16.mxu1 %v1820_v54  ;;  %v1253_v56 = vcombine.low %v2191_v6, %v2193_v7  ;;  %v1254_v57 = vcombine.low %v2195_v8, %v2197_v9  ;;  %v1255_v58 = vcombine.low %v2199_v10, %v2201_v11  ;;  %v503_v62 = vld [vmem:[%s2159_s9 + $0x18] sm:$0xff]  ;;  %v781_v24 = vld [vmem:[%s2173_s7] sm:$0x1]  ;;  %v782_v27 = vld [vmem:[%s2173_s7 + $0x1] sm:$0x1]  ;;  %s1079_s12 = sshll.u32 %s2218_s4, 4  ;;  %s2329_s12 = int_to_ptr.vmem [resolvable:$true] %s1079_s12 }
 0x1ca   : > { %1339 = vmatprep.subr.bf16.mxu0 %v1250_v49  ;;  %v1256_v59 = vcombine.low %v2203_v12, %v2205_v13  ;;  %v1257_v60 = vcombine.low %v2207_v14, %v2209_v15  ;;  %v505_v63 = vpack.c.bf16 %v503_v62, %v502_v61  ;;  %vm1821_vm0 = vmmov 0   ;;  %v783_v33 = vld [vmem:[%s2173_s7 + $0x2] sm:$0x1]  ;;  %v784_v42 = vld [vmem:[%s2173_s7 + $0x3] sm:$0x1]  ;;  %s2474_s29 = sld [smem:[#allocation29_spill]] }
 0x1cb   : > { %1340 = vmatpush3.bf16.msra.mxu0 %v1250_v49  ;;  %1355 = vmatprep.mubr.bf16.mxu0 %v504_v53  ;;  %v507_v1 = vlaneseq  ;;  %vm785_vm1 = vcmp.gt.s32.totalorder %v781_v24, 0  ;;  %v1822_v25 = vmov 0   ;;  %vm786_vm2 = vcmp.gt.s32.totalorder %v782_v27, 0  ;;  %s1677_s10 = scalar_lea.vmem %s2329_s12, 512  ;;  %s1823_s7 = smov [#allocation11]  }
 0x1cc   : > { %1341 = vmatprep.subr.bf16.mxu0 %v1251_v50  ;;  %1361 = vmatprep.mubr.msk.bf16.mxu1 %vm1821_vm0, %v1820_v54  ;;  %v789_v26 = vsel %vm785_vm1, 1, %v1822_v25  ;;  %vm817_vm4 = vcmask 64512   ;;  %v790_v29 = vsel %vm786_vm2, 1, %v1822_v25  ;;  %vm787_vm5 = vcmp.gt.s32.totalorder %v783_v33, 0  ;;  %p1678_p13 = scmp.ne.s32.totalorder %s2329_s12, %s1677_s10  ;;  %s1681_s15 = sshll.u32 %s1823_s7, 4  ;;  %s1682_s15 = int_to_ptr.vmem [resolvable:$false] %s1681_s15 }
 0x1cd   : > { %v508_v2 = vshrl.u32 %v507_v1, 7  ;;  %v620_v21 = vld [vmem:[#allocation2 + $0xc] sm:$0xf]  ;;  %v791_v38 = vsel %vm787_vm5, 1, %v1822_v25  ;;  %vm788_vm7 = vcmp.gt.s32.totalorder %v784_v42, 0  ;;  %vm877_vm10 = vcmask 1043456   ;;  %p1684_p5 = scmp.lt.s32.totalorder %s2329_s12, %s1682_s15 }
 0x1ce   : > { %v617_v0 = vld [vmem:[#allocation2] sm:$0xf]  ;;  %v618_v13 = vld [vmem:[#allocation2 + $0x4] sm:$0xf]  ;;  %v792_v47 = vsel %vm788_vm7, 1, %v1822_v25  ;;  %s1271_s8 = sshll.u32 %s2471_s13, 3  ;;  %p1679_p6 = pnand %p1678_p13, %p2054_p9 }
 0x1cf   : > { %1342 = vmatpush3.bf16.msra.mxu0 %v1251_v50  ;;  %1360 = vmatpush3.bf16.xpose.msra.mxu1 %v617_v0  ;;  %v2269_v3 = vsub.s32 0, %v508_v2  ;;  %v868_v25 = vld [vmem:[%s2167_s5 + $0x10] sm:$0xff]  ;;  %s1076_s9 = sadd.s32 %s2472_s11, %s1271_s8  ;;  %s1683_s19 = scalar_lea.vmem %s1682_s15, 1024 }
 0x1d0   : > { %1343 = vmatprep.subr.bf16.mxu0 %v1252_v55  ;;  %1365 = vmatprep.subr.bf16.mxu1 %v1820_v54  ;;  %v872_v27 = vpack.c.bf16 %v868_v25, %v868_v25  ;;  %s1265_s16 = sshll.u32 %s1076_s9, 7  ;;  %p1680_p1 = pneg %p1679_p6 }
 0x1d1   : > { %v510_v4 = vrot.slane %v2214_v16, %v2269_v3  ;;  %v619_v16 = vld [vmem:[#allocation2 + $0x8] sm:$0xf]  ;;  %v796_v28 = vrot.slane %v789_v26, %v2269_v3  ;;  %v800_v36 = vrot.slane %v790_v29, %v2269_v3  ;;  %v804_v45 = vrot.slane %v791_v38, %v2269_v3  ;;  %s2327_s1 = scalar_lea.hbm %s2474_s29, %s1265_s16  ;;  %p1685_p12 = scmp.lt.s32.totalorder %s1683_s19, %s1677_s10 }
 0x1d2   : > { %v808_v53 = vrot.slane %v792_v47, %v2269_v3 }
 0x1d3   : > { %1344 = vmatpush3.bf16.msra.mxu0 %v1252_v55  ;;  %vm809_vm3 = vcmp.eq.s32.totalorder %v796_v28, 1  ;;  %vm810_vm6 = vcmp.eq.s32.totalorder %v800_v36, 1  ;;  %vm811_vm8 = vcmp.eq.s32.totalorder %v804_v45, 1  ;;  %p1686_p2 = por %p1685_p12, %p1684_p5 }
 0x1d4   : > { %1345 = vmatprep.subr.bf16.mxu0 %v1253_v56  ;;  %vm812_vm9 = vcmp.eq.s32.totalorder %v808_v53, 1 }
 0x1d5   : > { %p1687_p7 = pnand %p1686_p2, %p1680_p1 }
 0x1d7   : > { %1346 = vmatpush3.bf16.msra.mxu0 %v1253_v56 }
 0x1d8   : > { %1347 = vmatprep.subr.bf16.mxu0 %v1254_v57 }
 0x1db   : > { %1348 = vmatpush3.bf16.msra.mxu0 %v1254_v57 }
 0x1dc   : > { %1349 = vmatprep.subr.bf16.mxu0 %v1255_v58 }
 0x1df   : > { %1350 = vmatpush3.bf16.msra.mxu0 %v1255_v58 }
 0x1e0   : > { %1351 = vmatprep.subr.bf16.mxu0 %v1256_v59 }
 0x1e3   : > { %1352 = vmatpush3.bf16.msra.mxu0 %v1256_v59 }
 0x1e4   : > { %1353 = vmatprep.subr.bf16.mxu0 %v1257_v60 }
 0x1e7   : > { %1354 = vmatpush3.bf16.msra.mxu0 %v1257_v60 }
 0x1e8   : > { %1383 = vmatprep.subr.bf16.mxu0 %v1820_v54 }
 0x1ea   : > { %1356 = vmatmul.mubr.bf16.vlgmr.msra.gmra.mrb[0].mxu0 %v505_v63 }
 0x1eb   : > { %1385 = vmatprep.mubr.msk.bf16.mxu0 %vm1821_vm0, %v1820_v54 }
 0x2bd   : > { %v1357_v5 = vpop.f32.mrb[0].mxu0 }
 0x2be   : > { %v594_v6 = vpop.f32.mrb[1].mxu0  ;;  %v603_v15 = vadd.f32 %v1357_v5, %v510_v4 }
 0x2bf   : > { %v595_v7 = vadd.f32 %v594_v6, %v510_v4  ;;  %v1358_v8 = vpop.f32.mrb[2].mxu0 }
 0x2c0   : > { %v597_v9 = vpop.f32.mrb[3].mxu0  ;;  %v611_v18 = vmax.f32 %v603_v15, 0.0  ;;  %v606_v20 = vadd.f32 %v1358_v8, %v510_v4 }
 0x2c1   : > { %v609_v10 = vmax.f32 %v595_v7, 0.0  ;;  %v598_v12 = vadd.f32 %v597_v9, %v510_v4 }
 0x2c2   : > { %v615_v19 = vpack.c.bf16 %v611_v18, %v611_v18  ;;  %v612_v22 = vmax.f32 %v606_v20, 0.0 }
 0x2c3   : > { %v613_v11 = vpack.c.bf16 %v609_v10, %v609_v10  ;;  %v610_v14 = vmax.f32 %v598_v12, 0.0 }
 0x2c4   : > { %v616_v23 = vpack.c.bf16 %v612_v22, %v612_v22 }
 0x2c5   : > { %1362 = vmatmul.mubr.bf16.vlgmr.msra.gmra.mrb[0].mxu1 %v613_v11  ;;  %v614_v17 = vpack.c.bf16 %v610_v14, %v610_v14 }
 0x2c6   : > { %1366 = vmatpush3.bf16.xpose.msra.mxu1 %v618_v13  ;;  %1367 = vmatprep.mubr.msk.bf16.mxu1 %vm1821_vm0, %v1820_v54 }
 0x2c7   : > { %1371 = vmatprep.subr.bf16.mxu1 %v1820_v54 }
 0x2cd   : > { %1368 = vmatmul.mubr.bf16.vlgmr.msra.gmra.mrb[4].mxu1 %v614_v17 }
 0x2ce   : > { %1372 = vmatpush3.bf16.xpose.msra.mxu1 %v619_v16  ;;  %1373 = vmatprep.mubr.msk.bf16.mxu1 %vm1821_vm0, %v1820_v54  ;;  %v866_v16 = vld [vmem:[%s2167_s5] sm:$0xff] }
 0x2cf   : > { %1377 = vmatprep.subr.bf16.mxu1 %v1820_v54 }
 0x2d5   : > { %1374 = vmatmul.mubr.bf16.vlgmr.msra.gmra.mrb[8].mxu1 %v615_v19  ;;  %v870_v19 = vpack.c.bf16 %v866_v16, %v866_v16 }
 0x2d6   : > { %1378 = vmatpush3.bf16.xpose.msra.mxu1 %v620_v21  ;;  %1379 = vmatprep.mubr.msk.bf16.mxu1 %vm1821_vm0, %v1820_v54  ;;  %v867_v21 = vld [vmem:[%s2167_s5 + $0x8] sm:$0xff] }
 0x2d7   : > { %1389 = vmatprep.subr.bf16.mxu1 %v1820_v54  ;;  %v879_v20 = vsel %vm877_vm10, %v870_v19, 0  ;;  %v871_v22 = vpack.c.bf16 %v867_v21, %v867_v21 }
 0x2d8   : > { %1384 = vmatpush3.bf16.msra.mxu0 %v879_v20 }
 0x2d9   : > { %1395 = vmatprep.subr.bf16.mxu0 %v1820_v54 }
 0x2dd   : > { %1380 = vmatmul.mubr.bf16.vlgmr.msra.gmra.mrb[12].mxu1 %v616_v23  ;;  %v925_v23 = vsel %vm877_vm10, %v871_v22, 0 }
 0x2de   : > { %1391 = vmatprep.mubr.msk.bf16.mxu1 %vm1821_vm0, %v1820_v54  ;;  %1390 = vmatpush3.bf16.msra.mxu1 %v925_v23 }
 0x2df   : > { %1401 = vmatprep.subr.bf16.mxu1 %v1820_v54 }
 0x398   : > { %v655_v30 = vpop.f32.mrb[0].mxu1 }
 0x399   : > { %v813_v31 = vsel %vm809_vm3, -1e+30, %v655_v30  ;;  %v1363_v32 = vpop.f32.mrb[1].mxu1 }
 0x39a   : > { %v658_v34 = vpop.f32.mrb[2].mxu1  ;;  %v818_v35 = vsel %vm817_vm4, %v813_v31, -inf  ;;  %v869_v32 = vld [vmem:[%s2167_s5 + $0x18] sm:$0xff]  ;;  %s1064_s5 = scalar_lea.sflag [#allocation5], %s2153_s30 }
 0x39b   : > { %819 = vmax.xlane.f32.xlu0 %v818_v35  ;;  %v1364_v37 = vpop.f32.mrb[3].mxu1  ;;  %v873_v34 = vpack.c.bf16 %v869_v32, %v869_v32 }
 0x39d   : > { %v1017_v38 = vsel %vm877_vm10, %v873_v34, 0 }
 0x3a0   : > { %v695_v39 = vpop.f32.mrb[4].mxu1 }
 0x3a1   : > { %v814_v40 = vsel %vm810_vm6, -1e+30, %v695_v39  ;;  %v1369_v41 = vpop.f32.mrb[5].mxu1 }
 0x3a2   : > { %v698_v43 = vpop.f32.mrb[6].mxu1  ;;  %v821_v44 = vsel %vm817_vm4, %v814_v40, -inf }
 0x3a3   : > { %822 = vmax.xlane.f32.xlu0 %v821_v44  ;;  %v1370_v46 = vpop.f32.mrb[7].mxu1 }
 0x3a8   : > { %v735_v48 = vpop.f32.mrb[8].mxu1 }
 0x3a9   : > { %v815_v49 = vsel %vm811_vm8, -1e+30, %v735_v48  ;;  %v1375_v50 = vpop.f32.mrb[9].mxu1 }
 0x3aa   : > { %v738_v51 = vpop.f32.mrb[10].mxu1  ;;  %v824_v52 = vsel %vm817_vm4, %v815_v49, -inf }
 0x3ab   : > { %825 = vmax.xlane.f32.xlu1 %v824_v52  ;;  %v1376_v55 = vpop.f32.mrb[11].mxu1 }
 0x3b0   : > { %v775_v56 = vpop.f32.mrb[12].mxu1 }
 0x3b1   : > { %v816_v57 = vsel %vm812_vm9, -1e+30, %v775_v56  ;;  %v1381_v58 = vpop.f32.mrb[13].mxu1 }
 0x3b2   : > { %v778_v59 = vpop.f32.mrb[14].mxu1  ;;  %v827_v60 = vsel %vm817_vm4, %v816_v57, -inf }
 0x3b3   : > { %828 = vmax.xlane.f32.xlu1 %v827_v60  ;;  %v1382_v61 = vpop.f32.mrb[15].mxu1 }
 0x428   : > { %v820_v62 = vpop.xlane.xlu0 %819 }
 0x429   : > { %v830_v63 = vsub.f32 %v813_v31, %v820_v62  ;;  %v971_v31 = vsel %vm877_vm10, %v872_v27, 0 }
 0x42b   : > { %v834_v0 = vmul.f32 1.442695, %v830_v63 }
 0x42d   : > { %1543 = vpow2.f32 %v834_v0 }
 0x430   : > { %v823_v1 = vpop.xlane.xlu0 %822 }
 0x431   : > { %v831_v2 = vsub.f32 %v814_v40, %v823_v1 }
 0x433   : > { %v836_v4 = vmul.f32 1.442695, %v831_v2 }
 0x435   : > { %1545 = vpow2.f32 %v836_v4 }
 0x437   : > { %v1544_v3 = vpop.eup %1543 }
 0x438   : > { %v826_v5 = vpop.xlane.xlu1 %825  ;;  %v842_v6 = vsel %vm817_vm4, %v1544_v3, 0.0 }
 0x439   : > { %v832_v7 = vsub.f32 %v815_v49, %v826_v5  ;;  %843 = vadd.xlane.f32.xlu0 %v842_v6 }
 0x43b   : > { %v838_v8 = vmul.f32 1.442695, %v832_v7 }
 0x43d   : > { %1547 = vpow2.f32 %v838_v8 }
 0x43f   : > { %v1546_v9 = vpop.eup %1545 }
 0x440   : > { %v829_v10 = vpop.xlane.xlu1 %828  ;;  %v845_v11 = vsel %vm817_vm4, %v1546_v9, 0.0 }
 0x441   : > { %v833_v12 = vsub.f32 %v816_v57, %v829_v10  ;;  %846 = vadd.xlane.f32.xlu1 %v845_v11 }
 0x443   : > { %v840_v13 = vmul.f32 1.442695, %v833_v12 }
 0x445   : > { %1549 = vpow2.f32 %v840_v13 }
 0x447   : > { %v1548_v14 = vpop.eup %1547 }
 0x448   : > { %v848_v15 = vsel %vm817_vm4, %v1548_v14, 0.0 }
 0x449   : > { %849 = vadd.xlane.f32.xlu0 %v848_v15 }
 0x44f   : > { %v1550_v17 = vpop.eup %1549 }
 0x450   : > { %v851_v18 = vsel %vm817_vm4, %v1550_v17, 0.0 }
 0x451   : > { %852 = vadd.xlane.f32.xlu1 %v851_v18 }
 0x4c6   : > { %v844_v24 = vpop.xlane.xlu0 %843 }
 0x4c7   : > { %1551 = vrcp.f32 %v844_v24 }
 0x4ce   : > { %v847_v26 = vpop.xlane.xlu1 %846 }
 0x4cf   : > { %1553 = vrcp.f32 %v847_v26 }
 0x4d1   : > { %v1552_v28 = vpop.eup %1551 }
 0x4d2   : > { %v858_v29 = vmul.f32 %v1552_v28, %v1544_v3 }
 0x4d4   : > { %v862_v30 = vpack.c.bf16 %v858_v29, %v858_v29 }
 0x4d6   : > { %1386 = vmatmul.mubr.msk.bf16.vlgmr.msra.gmra.mrb[4].mxu0 %vm817_vm4, %v862_v30  ;;  %v850_v33 = vpop.xlane.xlu0 %849 }
 0x4d7   : > { %1555 = vrcp.f32 %v850_v33  ;;  %1396 = vmatpush3.bf16.msra.mxu0 %v971_v31  ;;  %1397 = vmatprep.mubr.msk.bf16.mxu0 %vm1821_vm0, %v1820_v54 }
 0x4d9   : > { %v1554_v35 = vpop.eup %1553 }
 0x4da   : > { %v859_v36 = vmul.f32 %v1554_v35, %v1546_v9 }
 0x4dc   : > { %v863_v37 = vpack.c.bf16 %v859_v36, %v859_v36 }
 0x4de   : > { %1392 = vmatmul.mubr.msk.bf16.vlgmr.msra.gmra.mrb[16].mxu1 %vm817_vm4, %v863_v37  ;;  %v853_v39 = vpop.xlane.xlu1 %852 }
 0x4df   : > { %1557 = vrcp.f32 %v853_v39  ;;  %1402 = vmatpush3.bf16.msra.mxu1 %v1017_v38  ;;  %1403 = vmatprep.mubr.msk.bf16.mxu1 %vm1821_vm0, %v1820_v54 }
 0x4e1   : > { %v1556_v40 = vpop.eup %1555 }
 0x4e2   : > { %v860_v41 = vmul.f32 %v1556_v40, %v1548_v14 }
 0x4e4   : > { %v864_v42 = vpack.c.bf16 %v860_v41, %v860_v41 }
 0x4e6   : > { %1398 = vmatmul.mubr.msk.bf16.vlgmr.msra.gmra.mrb[8].mxu0 %vm817_vm4, %v864_v42 }
 0x4e9   : > { %v1558_v43 = vpop.eup %1557 }
 0x4ea   : > { %v861_v44 = vmul.f32 %v1558_v43, %v1550_v17 }
 0x4ec   : > { %v865_v45 = vpack.c.bf16 %v861_v44, %v861_v44 }
 0x4ee   : > { %1404 = vmatmul.mubr.msk.bf16.vlgmr.msra.gmra.mrb[20].mxu1 %vm817_vm4, %v865_v45 }
 0x5a9   : > { %v915_v46 = vpop.f32.mrb[4].mxu0 }
 0x5aa   : > { %1059 = vst [vmem:[%s2218_s4] sm:$0xff] %v915_v46  ;;  %v1387_v47 = vpop.f32.mrb[5].mxu0 }
 0x5ab   : > { %v918_v48 = vpop.f32.mrb[6].mxu0 }
 0x5ac   : > { %v1388_v49 = vpop.f32.mrb[7].mxu0 }
 0x5b1   : > { %v961_v54 = vpop.f32.mrb[16].mxu1 }
 0x5b2   : > { %1060 = vst [vmem:[%s2218_s4 + $0x8] sm:$0xff] %v961_v54  ;;  %v1393_v50 = vpop.f32.mrb[17].mxu1 }
 0x5b3   : > { %v964_v51 = vpop.f32.mrb[18].mxu1 }
 0x5b4   : > { %v1394_v52 = vpop.f32.mrb[19].mxu1 }
 0x5b9   : > { %v1007_v53 = vpop.f32.mrb[8].mxu0 }
 0x5ba   : > { %1061 = vst [vmem:[%s2218_s4 + $0x10] sm:$0xff] %v1007_v53  ;;  %v1399_v55 = vpop.f32.mrb[9].mxu0 }
 0x5bb   : > { %v1010_v56 = vpop.f32.mrb[10].mxu0 }
 0x5bc   : > { %v1400_v57 = vpop.f32.mrb[11].mxu0 }
 0x5c1   : > { %v1053_v58 = vpop.f32.mrb[20].mxu1 }
 0x5c2   : > { %1062 = vst [vmem:[%s2218_s4 + $0x18] sm:$0xff] %v1053_v58  ;;  %v1405_v59 = vpop.f32.mrb[21].mxu1 }
 0x5c3   : > { %v1056_v60 = vpop.f32.mrb[22].mxu1 }
 0x5c4   : > { %1690 = shalt.err (!%p1687_p7)
}
 0x5c5   : > { %s1691_s21 = scalar_lea.hbm %s2327_s1, 512  ;;  %s1695_s13 = scalar_lea.hbm %s2474_s29, 2048 }
 0x5c6   : > { %p1692_p11 = scmp.ne.s32.totalorder %s2327_s1, %s1691_s21  ;;  %p1696_p3 = scmp.lt.u32.totalorder %s2327_s1, %s2474_s29 }
 0x5c7   : > { %p1697_p4 = scmp.lt.u32.totalorder %s1695_s13, %s1691_s21  ;;  %p1699_p13 = scmp.lt.u32.totalorder %s1691_s21, %s2327_s1 }
 0x5c8   : > { %p1693_p10 = pnand %p1692_p11, %p2054_p9 }
 0x5c9   : > { %p1698_p8 = por %p1697_p4, %p1696_p3 }
 0x5ca   : > { %p1694_p0 = pneg %p1693_p10 }
 0x5cb   : > { %p1700_p6 = por %p1699_p13, %p1698_p8 }
 0x5cd   : > { %p1701_p1 = pnand %p1700_p6, %p1694_p0 }
 0x5cf   : > { %1704 = shalt.err (!%p1701_p1)
}
 0x5d0   : > { %s1824_s9 = smov 128   ;;  %s1825_s16 = smov 256   ;;  %v1406_v61 = vpop.f32.mrb[23].mxu1 }
 0x5d1   : > { %s1826_s18 = smov 8  }
 0x5d2   : > { %1417 = dma.vmem_to_hbm [thread:$0]  (%p2054_p9), %s2329_s12, 512, %s2327_s1, %s1064_s5, %s1824_s9, %s1825_s16, %s1826_s18  }
 0x5d3 PF: > { %s2475_s17 = sld [smem:[#allocation17_spill]]  ;;  %s2476_s10 = sld [smem:[#allocation23_spill]] }
 0x5d4   : > { %p1440_p5 = scmp.ge.s32.totalorder %s1807_s28, 2 }
 0x5d9   : > { %s1094_s7 = sand.u32 1, %s2475_s17   ;;  %p2477_p12 = scmp.ne.s32.totalorder %s2476_s10, 0 }
 0x5da   : > { %s1095_s15 = scalar_lea.sflag [#allocation5], %s1094_s7 }
 0x5db   : > { %p1434_p2 = pnand %p1440_p5, %p2477_p12 }
 0x5dd   : > { %1762 = dma.done.wait (!%p1434_p2), %s1095_s15, 512  }
 0x5de   : > { %1764 = vsyncadd (!%p1434_p2), %s1095_s15, 4294966784  ;;  %s25_s28 = sadd.s32 1, %s1807_s28   ;;  %s2478_s18 = sld [smem:[#allocation16_spill]] }
 0x5df   : > { %p22_p7 = scmp.ge.s32.totalorder %s25_s28, 6   ;;  %s2479_s30 = sld [smem:[#allocation24_spill]] }
 0x5e0   : > { %s2480_s14 = smov %s2495_s25  ;;  %s2481_s19 = smov %s1775_s20 }
 0x5e1   : > { %s2482_s20 = smov %s2066_s3  ;;  %s2483_s21 = smov %s1783_s22 }
 0x5e2   : > { %s2484_s22 = smov %s1787_s23  ;;  %s2485_s23 = smov %s2069_s6 }
 0x5e3   : > { %s2486_s24 = smov %s1799_s26  ;;  %s2487_s25 = smov %s1803_s27 }
 0x5e4   : > { %s2489_s27 = smov %s2480_s14  ;;  %24 = sbr.rel (!%p22_p7) target bundleno = 17 (0x11), region = 117 }
 0x5e5   : > { %s2488_s26 = smov %s2479_s30 }
 0x5eb   :  { %1100 = vsyncpa [#allocation4], 1 }
 0x5ec   :  { %1102 = vsyncpa [#allocation4 + $0x1], 1 }
 0x5ed   :  { %1103 = vsyncpa [#allocation7], 1 }
 0x5ee   :  { %1105 = vsyncpa [#allocation7 + $0x1], 1 }
 0x5ef   :  { %1106 = vsyncpa [#allocation10], 1 }
 0x5f0   :  { %1107 = vsyncpa [#allocation5], 1 }
 0x5f1   :  { %1109 = vsyncpa [#allocation5 + $0x1], 1 }

</bundles_post_ra>
